<compile_context>
chip_gen: v6e
topology: v6e:2x2x1
jax: 0.10.0
libtpu: 0.0.40
codegen_flags: <defaults>
</compile_context>

<pallas_src>
import math
from functools import partial

import jax
import jax.numpy as jnp
from jax import lax
from jax.experimental import pallas as pl
from jax.experimental.pallas import tpu as pltpu


def _attention_vdp_kernel(x_ref, vx_ref, wm_ref, w2_ref, ws_ref, sel_ref,
                          out_mu_ref, out_var_ref,
                          xb_ref, vxb_ref, sxb_ref,
                          *, bt, s, dh, inv_rd, masking):
    """One grid step = one head of one batch tile (grid = (batch_tiles, h))."""
    f32, bf16 = jnp.float32, jnp.bfloat16
    hd = pl.program_id(1)
    rows = bt * s

    # ---- per-batch-tile setup: runs once, at the first head step ------------
    @pl.when(hd == 0)
    def _init():
        x = x_ref[...]                       # (bt, s, D) f32
        vx = vx_ref[...]
        # residual_vdp, mode='identity': seed the resident output accumulators
        # with the skip connection; head contributions are added per step.
        out_mu_ref[...] = x
        out_var_ref[...] = vx
        xf = x.reshape(rows, -1)             # leading-dim merge (layout-preserving)
        vxf = vx.reshape(rows, -1)
        # hoisted bf16 operand casts, reused by every head step of this tile
        xb_ref[...] = xf.astype(bf16)
        vxb_ref[...] = vxf.astype(bf16)
        sxb_ref[...] = (vxf + xf * xf).astype(bf16)

    xb = xb_ref[...]                          # (rows, D) bf16
    vxb = vxb_ref[...]                        # var_x              (bf16)
    sxb = sxb_ref[...]                        # var_x + x^2        (bf16)

    # ---- per-head LinearVDP projections (no lane slicing of activations) ----
    base = hd * 3                             # head-major [q, k, v] weight slabs
    q = jnp.dot(xb, wm_ref[base + 0], preferred_element_type=f32)   # (rows, dh)
    k = jnp.dot(xb, wm_ref[base + 1], preferred_element_type=f32)
    v = jnp.dot(xb, wm_ref[base + 2], preferred_element_type=f32)
    # var = vx @ W^2 + (vx + x^2) @ S  — two dots + add; S kept in its own dot
    # so tiny weight variances are not swamped inside a bf16 (W^2 + S) matrix.
    vq = (jnp.dot(vxb, w2_ref[base + 0], preferred_element_type=f32)
          + jnp.dot(sxb, ws_ref[base + 0], preferred_element_type=f32))
    vk = (jnp.dot(vxb, w2_ref[base + 1], preferred_element_type=f32)
          + jnp.dot(sxb, ws_ref[base + 1], preferred_element_type=f32))
    vv = (jnp.dot(vxb, w2_ref[base + 2], preferred_element_type=f32)
          + jnp.dot(sxb, ws_ref[base + 2], preferred_element_type=f32))

    def b3(t):                                # (rows, dh) -> (bt, s, dh): leading split
        return t.reshape(bt, s, dh)

    # ---- quadratic_vdp(q, vq, k^T, vk^T), scaled by 1/sqrt(D) ---------------
    a = jnp.einsum('bqd,bkd->bqk', b3(q.astype(bf16)), b3(k.astype(bf16)),
                   preferred_element_type=f32) * inv_rd
    va = (jnp.einsum('bqd,bkd->bqk', b3(vq.astype(bf16)),
                     b3((vk + k * k).astype(bf16)), preferred_element_type=f32)
          + jnp.einsum('bqd,bkd->bqk', b3((q * q).astype(bf16)),
                       b3(vk.astype(bf16)), preferred_element_type=f32)
          ) * (inv_rd * inv_rd)

    if masking:
        r_ = lax.broadcasted_iota(jnp.int32, (s, s), 0)
        c_ = lax.broadcasted_iota(jnp.int32, (s, s), 1)
        # Large finite negative instead of -inf (exp underflows to 0).  NOTE:
        # for a causal mask the diagonal is always unmasked; a fully-masked
        # padding row would give a uniform softmax here instead of NaN.
        a = jnp.where((c_ > r_)[None, :, :], jnp.float32(-1e30), a)

    # ---- softmax_vdp: softmax mean + diagonal delta-method variance ---------
    m = jnp.max(a, axis=-1, keepdims=True)
    e = jnp.exp(a - m)
    p = e * pl.reciprocal(jnp.sum(e, axis=-1, keepdims=True), approx=True)
    g = p - p * p
    vp = g * g * va

    # ---- quadratic_vdp(p, vp, v, vv) -----------------------------------------
    o = jnp.einsum('bqk,bkd->bqd', p.astype(bf16), b3(v.astype(bf16)),
                   preferred_element_type=f32)                        # (bt, s, dh)
    vo = (jnp.einsum('bqk,bkd->bqd', vp.astype(bf16),
                     b3((vv + v * v).astype(bf16)), preferred_element_type=f32)
          + jnp.einsum('bqk,bkd->bqd', (p * p).astype(bf16),
                       b3(vv.astype(bf16)), preferred_element_type=f32))

    # ---- place this head's dh columns into the (bt, s, D) outputs via a
    # one-hot (dh, D) matmul: MXU "scatter" avoids sub-128-lane slice stores.
    sel = sel_ref[hd]                                                 # (dh, D), exact 0/1
    out_mu_ref[...] += jnp.dot(o.reshape(rows, dh).astype(bf16), sel,
                               preferred_element_type=f32).reshape(bt, s, -1)
    out_var_ref[...] += jnp.dot(vo.reshape(rows, dh).astype(bf16), sel,
                                preferred_element_type=f32).reshape(bt, s, -1)


def attention_head_vdp(x, var_x, params, *, h, masking=False):
    """Pallas implementation of AttentionHeadVDP.forward (mode='identity')."""
    B, S, D = x.shape
    assert D % h == 0
    dh = D // h
    inv_rd = 1.0 / math.sqrt(D)

    # batch folding: present M = bt*S rows to the MXU per grid step (target 256)
    bt = min(B, max(1, 256 // S))
    while B % bt:
        bt -= 1
    num_bt = B // bt

    # head-major per-head weight slabs.  nn.Linear weight is (out, in); the
    # right-multiply matrix is W.T, reshaped so slab [3*head + t] is (D, dh).
    def head_major(w):
        return w.T.reshape(D, h, dh).transpose(1, 0, 2)          # (h, D, dh)

    wq, wk, wv = (head_major(params[n]) for n in ("wq", "wk", "wv"))
    sq, sk, sv = (head_major(params[n]) for n in ("sq", "sk", "sv"))

    bf16 = jnp.bfloat16
    w_mean = jnp.stack([wq, wk, wv], axis=1).reshape(3 * h, D, dh).astype(bf16)
    w_sq = jnp.stack([wq * wq, wk * wk, wv * wv],
                     axis=1).reshape(3 * h, D, dh).astype(bf16)
    w_var = jnp.stack([sq, sk, sv], axis=1).reshape(3 * h, D, dh).astype(bf16)
    # one-hot head-placement matrices (exact in bf16): select[hd] is (dh, D)
    select = jnp.eye(D, dtype=bf16).reshape(h, dh, D)

    x_spec = pl.BlockSpec((bt, S, D), lambda b, hd: (b, 0, 0))
    out_spec = pl.BlockSpec((bt, S, D), lambda b, hd: (b, 0, 0))
    # constant index maps -> weights/selectors DMA'd once and stay resident
    w_spec = pl.BlockSpec((3 * h, D, dh), lambda b, hd: (0, 0, 0))
    sel_spec = pl.BlockSpec((h, dh, D), lambda b, hd: (0, 0, 0))

    # generation-aware VMEM budget: ~3/4 of physical, capped at 100 MiB
    # (v7x: ~48 MiB of 64; v5e/v6e: ~96 MiB of 128).  Conservative fallback.
    try:
        vmem_cap = int(pltpu.get_tpu_info().vmem_capacity_bytes)
    except Exception:
        vmem_cap = 64 * 1024 * 1024
    vmem_limit = int(min((vmem_cap * 3) // 4, 100 * 1024 * 1024))

    flops = int(B * S * D * (18 * D      # 9 per-head projection dots
                             + 12 * S    # score / variance / output matmuls
                             + 4 * D))   # one-hot head placement
    transcendentals = int(B * h * (S * S + S))           # exp + approx recip
    bytes_accessed = int(4 * B * S * D * 4               # x, vx in + mu, var out
                         + 3 * (3 * h * D * dh) * 2      # bf16 weight slabs
                         + h * dh * D * 2)               # bf16 selectors

    kernel = partial(_attention_vdp_kernel, bt=bt, s=S, dh=dh,
                     inv_rd=inv_rd, masking=masking)

    out_mu, out_var = pl.pallas_call(
        kernel,
        out_shape=(jax.ShapeDtypeStruct((B, S, D), jnp.float32),
                   jax.ShapeDtypeStruct((B, S, D), jnp.float32)),
        grid_spec=pltpu.PrefetchScalarGridSpec(
            num_scalar_prefetch=0,
            grid=(num_bt, h),
            in_specs=[x_spec, x_spec,                 # x, var_x
                      w_spec, w_spec, w_spec,         # W, W^2, S (head-major)
                      sel_spec],                      # one-hot head placement
            out_specs=[out_spec, out_spec],
            scratch_shapes=[pltpu.VMEM((bt * S, D), jnp.bfloat16)
                            for _ in range(3)],       # xb, vxb, vx+x^2 (bf16)
        ),
        compiler_params=pltpu.CompilerParams(
            dimension_semantics=("parallel", "arbitrary"),
            vmem_limit_bytes=vmem_limit),
        cost_estimate=pl.CostEstimate(flops=flops,
                                      transcendentals=transcendentals,
                                      bytes_accessed=bytes_accessed),
    )(x, var_x, w_mean, w_sq, w_var, select)
    return out_mu, out_var


def attention_head_vdp_reference(x, var_x, params, *, h, masking=False):
    """Pure-JAX f32 (HIGHEST) reference with identical VDP math."""
    B, S, D = x.shape
    dh = D // h
    rd = math.sqrt(D)
    hi = lax.Precision.HIGHEST

    def linear_vdp(w, s):
        wt, st = w.T, s.T
        mu = jnp.einsum("bsd,de->bse", x, wt, precision=hi)
        var = (jnp.einsum("bsd,de->bse", var_x, wt * wt + st, precision=hi)
               + jnp.einsum("bsd,de->bse", x * x, st, precision=hi))
        return mu, var

    def split(t):
        return jnp.transpose(t.reshape(B, S, h, dh), (0, 2, 1, 3))

    q, vq = map(split, linear_vdp(params["wq"], params["sq"]))
    k, vk = map(split, linear_vdp(params["wk"], params["sk"]))
    v, vv = map(split, linear_vdp(params["wv"], params["sv"]))

    a = jnp.einsum("bhqd,bhkd->bhqk", q, k, precision=hi) / rd
    va = (jnp.einsum("bhqd,bhkd->bhqk", vq, vk + k * k, precision=hi)
          + jnp.einsum("bhqd,bhkd->bhqk", q * q, vk, precision=hi)) / (rd * rd)

    if masking:
        rows = lax.broadcasted_iota(jnp.int32, (S, S), 0)
        cols = lax.broadcasted_iota(jnp.int32, (S, S), 1)
        a = jnp.where((cols > rows)[None, None], -jnp.inf, a)

    p = jax.nn.softmax(a, axis=-1)
    g = p * (1.0 - p)
    vp = g * g * va

    o = jnp.einsum("bhqk,bhkd->bhqd", p, v, precision=hi)
    vo = (jnp.einsum("bhqk,bhkd->bhqd", vp, vv + v * v, precision=hi)
          + jnp.einsum("bhqk,bhkd->bhqd", p * p, vv, precision=hi))

    mu = jnp.transpose(o, (0, 2, 1, 3)).reshape(B, S, D) + x
    var = jnp.transpose(vo, (0, 2, 1, 3)).reshape(B, S, D) + var_x
    return mu, var


if __name__ == "__main__":
    B, S, D, H = 2, 8, 32, 4
    var_init = 1e-8

    key = jax.random.PRNGKey(0)
    kx, kv, kq, kk, kw = jax.random.split(key, 5)

    x = jax.random.normal(kx, (B, S, D), dtype=jnp.float32)
    var_x = 1e-3 * jax.random.uniform(kv, (B, S, D), dtype=jnp.float32)

    scale = 1.0 / math.sqrt(D)
    params = {
        "wq": scale * jax.random.normal(kq, (D, D), dtype=jnp.float32),
        "wk": scale * jax.random.normal(kk, (D, D), dtype=jnp.float32),
        "wv": scale * jax.random.normal(kw, (D, D), dtype=jnp.float32),
        # weight-variance parameters, deterministically initialized to var_init
        "sq": jnp.full((D, D), var_init, dtype=jnp.float32),
        "sk": jnp.full((D, D), var_init, dtype=jnp.float32),
        "sv": jnp.full((D, D), var_init, dtype=jnp.float32),
    }

    for mask in (False, True):
        mu, var = attention_head_vdp(x, var_x, params, h=H, masking=mask)
        mu, var = jax.block_until_ready((mu, var))
        mu_ref, var_ref = attention_head_vdp_reference(x, var_x, params,
                                                       h=H, masking=mask)
        assert mu.shape == (B, S, D) and var.shape == (B, S, D)
        # bf16 MXU operands + approx reciprocal vs. an f32 HIGHEST reference:
        # expect <~1% drift, so tolerances are bf16-level.
        assert jnp.allclose(mu, mu_ref, rtol=3e-2, atol=3e-2), \
            f"mean mismatch (masking={mask})"
        assert jnp.allclose(var, var_ref, rtol=3e-2, atol=3e-5), \
            f"variance mismatch (masking={mask})"

    print("KERNEL_OK")
</pallas_src>

<mosaic_0001>
module attributes {stable_mosaic.version = 11 : i64} {
  func.func @_attention_vdp_kernel(%arg0: i32, %arg1: i32, %arg2: memref<2x8x32xf32, #tpu.memory_space<vmem>>, %arg3: memref<2x8x32xf32, #tpu.memory_space<vmem>>, %arg4: memref<12x32x8xbf16, #tpu.memory_space<vmem>>, %arg5: memref<12x32x8xbf16, #tpu.memory_space<vmem>>, %arg6: memref<12x32x8xbf16, #tpu.memory_space<vmem>>, %arg7: memref<4x8x32xbf16, #tpu.memory_space<vmem>>, %arg8: memref<2x8x32xf32, #tpu.memory_space<vmem>>, %arg9: memref<2x8x32xf32, #tpu.memory_space<vmem>>, %arg10: memref<16x32xbf16, #tpu.memory_space<vmem>>, %arg11: memref<16x32xbf16, #tpu.memory_space<vmem>>, %arg12: memref<16x32xbf16, #tpu.memory_space<vmem>>) attributes {dimension_semantics = [#tpu.dimension_semantics<parallel>, #tpu.dimension_semantics<arbitrary>], iteration_bounds = array<i64: 1, 4>, scalar_prefetch = 0 : i64, scratch_operands = 3 : i64, tpu.core_type = #tpu.core_type<tc>, window_params = [{transform_indices = @transform_0, window_bounds = array<i64: 2, 8, 32>}, {transform_indices = @transform_1, window_bounds = array<i64: 2, 8, 32>}, {pipeline_mode = #tpu.pipeline_mode<synchronous>, transform_indices = @transform_2, window_bounds = array<i64: 12, 32, 8>}, {pipeline_mode = #tpu.pipeline_mode<synchronous>, transform_indices = @transform_3, window_bounds = array<i64: 12, 32, 8>}, {pipeline_mode = #tpu.pipeline_mode<synchronous>, transform_indices = @transform_4, window_bounds = array<i64: 12, 32, 8>}, {pipeline_mode = #tpu.pipeline_mode<synchronous>, transform_indices = @transform_5, window_bounds = array<i64: 4, 8, 32>}, {transform_indices = @transform_6, window_bounds = array<i64: 2, 8, 32>}, {transform_indices = @transform_7, window_bounds = array<i64: 2, 8, 32>}]} {
    %c0_i32 = arith.constant 0 : i32
    %0 = arith.cmpi eq, %arg1, %c0_i32 : i32
    %1 = arith.extui %0 : i1 to i32
    %c0_i32_0 = arith.constant 0 : i32
    %2 = arith.cmpi ne, %1, %c0_i32_0 : i32
    scf.if %2 {
      %c0_65 = arith.constant 0 : index
      %c0_66 = arith.constant 0 : index
      %c0_67 = arith.constant 0 : index
      %125 = vector.load %arg2[%c0_65, %c0_66, %c0_67] : memref<2x8x32xf32, #tpu.memory_space<vmem>>, vector<2x8x32xf32>
      %c0_68 = arith.constant 0 : index
      %c0_69 = arith.constant 0 : index
      %c0_70 = arith.constant 0 : index
      %126 = vector.load %arg3[%c0_68, %c0_69, %c0_70] : memref<2x8x32xf32, #tpu.memory_space<vmem>>, vector<2x8x32xf32>
      %c0_71 = arith.constant 0 : index
      %c0_72 = arith.constant 0 : index
      %c0_73 = arith.constant 0 : index
      %127 = vector.load %arg8[%c0_71, %c0_72, %c0_73] : memref<2x8x32xf32, #tpu.memory_space<vmem>>, vector<2x8x32xf32>
      tpu.vector_store %arg8[%c0_71, %c0_72, %c0_73], %125 {strides = array<i32>} : memref<2x8x32xf32, #tpu.memory_space<vmem>>, vector<2x8x32xf32>,
      %c0_74 = arith.constant 0 : index
      %c0_75 = arith.constant 0 : index
      %c0_76 = arith.constant 0 : index
      %128 = vector.load %arg9[%c0_74, %c0_75, %c0_76] : memref<2x8x32xf32, #tpu.memory_space<vmem>>, vector<2x8x32xf32>
      tpu.vector_store %arg9[%c0_74, %c0_75, %c0_76], %126 {strides = array<i32>} : memref<2x8x32xf32, #tpu.memory_space<vmem>>, vector<2x8x32xf32>,
      %129 = vector.shape_cast %125 : vector<2x8x32xf32> to vector<16x32xf32>
      %130 = vector.shape_cast %126 : vector<2x8x32xf32> to vector<16x32xf32>
      %131 = arith.truncf %129 : vector<16x32xf32> to vector<16x32xbf16>
      %c0_77 = arith.constant 0 : index
      %c0_78 = arith.constant 0 : index
      %132 = vector.load %arg10[%c0_77, %c0_78] : memref<16x32xbf16, #tpu.memory_space<vmem>>, vector<16x32xbf16>
      tpu.vector_store %arg10[%c0_77, %c0_78], %131 {strides = array<i32>} : memref<16x32xbf16, #tpu.memory_space<vmem>>, vector<16x32xbf16>,
      %133 = arith.truncf %130 : vector<16x32xf32> to vector<16x32xbf16>
      %c0_79 = arith.constant 0 : index
      %c0_80 = arith.constant 0 : index
      %134 = vector.load %arg11[%c0_79, %c0_80] : memref<16x32xbf16, #tpu.memory_space<vmem>>, vector<16x32xbf16>
      tpu.vector_store %arg11[%c0_79, %c0_80], %133 {strides = array<i32>} : memref<16x32xbf16, #tpu.memory_space<vmem>>, vector<16x32xbf16>,
      %135 = arith.mulf %129, %129 : vector<16x32xf32>
      %136 = arith.addf %130, %135 : vector<16x32xf32>
      %137 = arith.truncf %136 : vector<16x32xf32> to vector<16x32xbf16>
      %c0_81 = arith.constant 0 : index
      %c0_82 = arith.constant 0 : index
      %138 = vector.load %arg12[%c0_81, %c0_82] : memref<16x32xbf16, #tpu.memory_space<vmem>>, vector<16x32xbf16>
      tpu.vector_store %arg12[%c0_81, %c0_82], %137 {strides = array<i32>} : memref<16x32xbf16, #tpu.memory_space<vmem>>, vector<16x32xbf16>,
    } else {
    }
    %c0 = arith.constant 0 : index
    %c0_1 = arith.constant 0 : index
    %3 = vector.load %arg10[%c0, %c0_1] : memref<16x32xbf16, #tpu.memory_space<vmem>>, vector<16x32xbf16>
    %c0_2 = arith.constant 0 : index
    %c0_3 = arith.constant 0 : index
    %4 = vector.load %arg11[%c0_2, %c0_3] : memref<16x32xbf16, #tpu.memory_space<vmem>>, vector<16x32xbf16>
    %c0_4 = arith.constant 0 : index
    %c0_5 = arith.constant 0 : index
    %5 = vector.load %arg12[%c0_4, %c0_5] : memref<16x32xbf16, #tpu.memory_space<vmem>>, vector<16x32xbf16>
    %c3_i32 = arith.constant 3 : i32
    %6 = arith.muli %arg1, %c3_i32 : i32
    %c0_i32_6 = arith.constant 0 : i32
    %7 = arith.addi %6, %c0_i32_6 : i32
    %8 = arith.index_cast %7 : i32 to index
    %c0_7 = arith.constant 0 : index
    %c0_8 = arith.constant 0 : index
    %9 = vector.load %arg4[%8, %c0_7, %c0_8] : memref<12x32x8xbf16, #tpu.memory_space<vmem>>, vector<1x32x8xbf16>
    %10 = vector.shape_cast %9 : vector<1x32x8xbf16> to vector<32x8xbf16>
    %cst = arith.constant dense<0.000000e+00> : vector<16x8xf32>
    %11 = tpu.matmul %3, %10, %cst {dimension_numbers = #tpu.dot_dimension_numbers<[1], [0], [0], [1], [0, 0, 1, 1], [], []>} : vector<16x32xbf16>, vector<32x8xbf16>, vector<16x8xf32> -> vector<16x8xf32>
    %c1_i32 = arith.constant 1 : i32
    %12 = arith.addi %6, %c1_i32 : i32
    %13 = arith.index_cast %12 : i32 to index
    %c0_9 = arith.constant 0 : index
    %c0_10 = arith.constant 0 : index
    %14 = vector.load %arg4[%13, %c0_9, %c0_10] : memref<12x32x8xbf16, #tpu.memory_space<vmem>>, vector<1x32x8xbf16>
    %15 = vector.shape_cast %14 : vector<1x32x8xbf16> to vector<32x8xbf16>
    %cst_11 = arith.constant dense<0.000000e+00> : vector<16x8xf32>
    %16 = tpu.matmul %3, %15, %cst_11 {dimension_numbers = #tpu.dot_dimension_numbers<[1], [0], [0], [1], [0, 0, 1, 1], [], []>} : vector<16x32xbf16>, vector<32x8xbf16>, vector<16x8xf32> -> vector<16x8xf32>
    %c2_i32 = arith.constant 2 : i32
    %17 = arith.addi %6, %c2_i32 : i32
    %18 = arith.index_cast %17 : i32 to index
    %c0_12 = arith.constant 0 : index
    %c0_13 = arith.constant 0 : index
    %19 = vector.load %arg4[%18, %c0_12, %c0_13] : memref<12x32x8xbf16, #tpu.memory_space<vmem>>, vector<1x32x8xbf16>
    %20 = vector.shape_cast %19 : vector<1x32x8xbf16> to vector<32x8xbf16>
    %cst_14 = arith.constant dense<0.000000e+00> : vector<16x8xf32>
    %21 = tpu.matmul %3, %20, %cst_14 {dimension_numbers = #tpu.dot_dimension_numbers<[1], [0], [0], [1], [0, 0, 1, 1], [], []>} : vector<16x32xbf16>, vector<32x8xbf16>, vector<16x8xf32> -> vector<16x8xf32>
    %c0_i32_15 = arith.constant 0 : i32
    %22 = arith.addi %6, %c0_i32_15 : i32
    %23 = arith.index_cast %22 : i32 to index
    %c0_16 = arith.constant 0 : index
    %c0_17 = arith.constant 0 : index
    %24 = vector.load %arg5[%23, %c0_16, %c0_17] : memref<12x32x8xbf16, #tpu.memory_space<vmem>>, vector<1x32x8xbf16>
    %25 = vector.shape_cast %24 : vector<1x32x8xbf16> to vector<32x8xbf16>
    %cst_18 = arith.constant dense<0.000000e+00> : vector<16x8xf32>
    %26 = tpu.matmul %4, %25, %cst_18 {dimension_numbers = #tpu.dot_dimension_numbers<[1], [0], [0], [1], [0, 0, 1, 1], [], []>} : vector<16x32xbf16>, vector<32x8xbf16>, vector<16x8xf32> -> vector<16x8xf32>
    %c0_i32_19 = arith.constant 0 : i32
    %27 = arith.addi %6, %c0_i32_19 : i32
    %28 = arith.index_cast %27 : i32 to index
    %c0_20 = arith.constant 0 : index
    %c0_21 = arith.constant 0 : index
    %29 = vector.load %arg6[%28, %c0_20, %c0_21] : memref<12x32x8xbf16, #tpu.memory_space<vmem>>, vector<1x32x8xbf16>
    %30 = vector.shape_cast %29 : vector<1x32x8xbf16> to vector<32x8xbf16>
    %cst_22 = arith.constant dense<0.000000e+00> : vector<16x8xf32>
    %31 = tpu.matmul %5, %30, %cst_22 {dimension_numbers = #tpu.dot_dimension_numbers<[1], [0], [0], [1], [0, 0, 1, 1], [], []>} : vector<16x32xbf16>, vector<32x8xbf16>, vector<16x8xf32> -> vector<16x8xf32>
    %32 = arith.addf %26, %31 : vector<16x8xf32>
    %c1_i32_23 = arith.constant 1 : i32
    %33 = arith.addi %6, %c1_i32_23 : i32
    %34 = arith.index_cast %33 : i32 to index
    %c0_24 = arith.constant 0 : index
    %c0_25 = arith.constant 0 : index
    %35 = vector.load %arg5[%34, %c0_24, %c0_25] : memref<12x32x8xbf16, #tpu.memory_space<vmem>>, vector<1x32x8xbf16>
    %36 = vector.shape_cast %35 : vector<1x32x8xbf16> to vector<32x8xbf16>
    %cst_26 = arith.constant dense<0.000000e+00> : vector<16x8xf32>
    %37 = tpu.matmul %4, %36, %cst_26 {dimension_numbers = #tpu.dot_dimension_numbers<[1], [0], [0], [1], [0, 0, 1, 1], [], []>} : vector<16x32xbf16>, vector<32x8xbf16>, vector<16x8xf32> -> vector<16x8xf32>
    %c1_i32_27 = arith.constant 1 : i32
    %38 = arith.addi %6, %c1_i32_27 : i32
    %39 = arith.index_cast %38 : i32 to index
    %c0_28 = arith.constant 0 : index
    %c0_29 = arith.constant 0 : index
    %40 = vector.load %arg6[%39, %c0_28, %c0_29] : memref<12x32x8xbf16, #tpu.memory_space<vmem>>, vector<1x32x8xbf16>
    %41 = vector.shape_cast %40 : vector<1x32x8xbf16> to vector<32x8xbf16>
    %cst_30 = arith.constant dense<0.000000e+00> : vector<16x8xf32>
    %42 = tpu.matmul %5, %41, %cst_30 {dimension_numbers = #tpu.dot_dimension_numbers<[1], [0], [0], [1], [0, 0, 1, 1], [], []>} : vector<16x32xbf16>, vector<32x8xbf16>, vector<16x8xf32> -> vector<16x8xf32>
    %43 = arith.addf %37, %42 : vector<16x8xf32>
    %c2_i32_31 = arith.constant 2 : i32
    %44 = arith.addi %6, %c2_i32_31 : i32
    %45 = arith.index_cast %44 : i32 to index
    %c0_32 = arith.constant 0 : index
    %c0_33 = arith.constant 0 : index
    %46 = vector.load %arg5[%45, %c0_32, %c0_33] : memref<12x32x8xbf16, #tpu.memory_space<vmem>>, vector<1x32x8xbf16>
    %47 = vector.shape_cast %46 : vector<1x32x8xbf16> to vector<32x8xbf16>
    %cst_34 = arith.constant dense<0.000000e+00> : vector<16x8xf32>
    %48 = tpu.matmul %4, %47, %cst_34 {dimension_numbers = #tpu.dot_dimension_numbers<[1], [0], [0], [1], [0, 0, 1, 1], [], []>} : vector<16x32xbf16>, vector<32x8xbf16>, vector<16x8xf32> -> vector<16x8xf32>
    %c2_i32_35 = arith.constant 2 : i32
    %49 = arith.addi %6, %c2_i32_35 : i32
    %50 = arith.index_cast %49 : i32 to index
    %c0_36 = arith.constant 0 : index
    %c0_37 = arith.constant 0 : index
    %51 = vector.load %arg6[%50, %c0_36, %c0_37] : memref<12x32x8xbf16, #tpu.memory_space<vmem>>, vector<1x32x8xbf16>
    %52 = vector.shape_cast %51 : vector<1x32x8xbf16> to vector<32x8xbf16>
    %cst_38 = arith.constant dense<0.000000e+00> : vector<16x8xf32>
    %53 = tpu.matmul %5, %52, %cst_38 {dimension_numbers = #tpu.dot_dimension_numbers<[1], [0], [0], [1], [0, 0, 1, 1], [], []>} : vector<16x32xbf16>, vector<32x8xbf16>, vector<16x8xf32> -> vector<16x8xf32>
    %54 = arith.addf %48, %53 : vector<16x8xf32>
    %55 = arith.truncf %11 : vector<16x8xf32> to vector<16x8xbf16>
    %56 = vector.shape_cast %55 : vector<16x8xbf16> to vector<2x8x8xbf16>
    %57 = arith.truncf %16 : vector<16x8xf32> to vector<16x8xbf16>
    %58 = vector.shape_cast %57 : vector<16x8xbf16> to vector<2x8x8xbf16>
    "tpu.trace_start"() <{level = 10 : i32, message = "bqd,bkd->bqk"}> : () -> ()
    %cst_39 = arith.constant dense<0.000000e+00> : vector<2x8x8xf32>
    %59 = tpu.matmul %56, %58, %cst_39 {dimension_numbers = #tpu.dot_dimension_numbers<[2], [2], [1], [1], [0, 0, 0, 1, 1, 1], [0], [0]>} : vector<2x8x8xbf16>, vector<2x8x8xbf16>, vector<2x8x8xf32> -> vector<2x8x8xf32>
    "tpu.trace_stop"() : () -> ()
    %cst_40 = arith.constant 0.176776692 : f32
    %60 = vector.broadcast %cst_40 : f32 to vector<2x8x8xf32>
    %61 = arith.mulf %59, %60 : vector<2x8x8xf32>
    %62 = arith.truncf %32 : vector<16x8xf32> to vector<16x8xbf16>
    %63 = vector.shape_cast %62 : vector<16x8xbf16> to vector<2x8x8xbf16>
    %64 = arith.mulf %16, %16 : vector<16x8xf32>
    %65 = arith.addf %43, %64 : vector<16x8xf32>
    %66 = arith.truncf %65 : vector<16x8xf32> to vector<16x8xbf16>
    %67 = vector.shape_cast %66 : vector<16x8xbf16> to vector<2x8x8xbf16>
    "tpu.trace_start"() <{level = 10 : i32, message = "bqd,bkd->bqk"}> : () -> ()
    %cst_41 = arith.constant dense<0.000000e+00> : vector<2x8x8xf32>
    %68 = tpu.matmul %63, %67, %cst_41 {dimension_numbers = #tpu.dot_dimension_numbers<[2], [2], [1], [1], [0, 0, 0, 1, 1, 1], [0], [0]>} : vector<2x8x8xbf16>, vector<2x8x8xbf16>, vector<2x8x8xf32> -> vector<2x8x8xf32>
    "tpu.trace_stop"() : () -> ()
    %69 = arith.mulf %11, %11 : vector<16x8xf32>
    %70 = arith.truncf %69 : vector<16x8xf32> to vector<16x8xbf16>
    %71 = vector.shape_cast %70 : vector<16x8xbf16> to vector<2x8x8xbf16>
    %72 = arith.truncf %43 : vector<16x8xf32> to vector<16x8xbf16>
    %73 = vector.shape_cast %72 : vector<16x8xbf16> to vector<2x8x8xbf16>
    "tpu.trace_start"() <{level = 10 : i32, message = "bqd,bkd->bqk"}> : () -> ()
    %cst_42 = arith.constant dense<0.000000e+00> : vector<2x8x8xf32>
    %74 = tpu.matmul %71, %73, %cst_42 {dimension_numbers = #tpu.dot_dimension_numbers<[2], [2], [1], [1], [0, 0, 0, 1, 1, 1], [0], [0]>} : vector<2x8x8xbf16>, vector<2x8x8xbf16>, vector<2x8x8xf32> -> vector<2x8x8xf32>
    "tpu.trace_stop"() : () -> ()
    %75 = arith.addf %68, %74 : vector<2x8x8xf32>
    %cst_43 = arith.constant 3.125000e-02 : f32
    %76 = vector.broadcast %cst_43 : f32 to vector<2x8x8xf32>
    %77 = arith.mulf %75, %76 : vector<2x8x8xf32>
    %cst_44 = arith.constant dense<0xFF800000> : vector<2x8xf32>
    %78 = vector.multi_reduction <maximumf>, %61, %cst_44 [2] : vector<2x8x8xf32> to vector<2x8xf32>
    %79 = vector.shape_cast %78 : vector<2x8xf32> to vector<2x8x1xf32>
    %80 = vector.broadcast %79 : vector<2x8x1xf32> to vector<2x8x8xf32>
    %81 = arith.subf %61, %80 : vector<2x8x8xf32>
    %82 = math.exp %81 : vector<2x8x8xf32>
    %cst_45 = arith.constant dense<0.000000e+00> : vector<2x8xf32>
    %83 = vector.multi_reduction <add>, %82, %cst_45 [2] : vector<2x8x8xf32> to vector<2x8xf32>
    %84 = vector.shape_cast %83 : vector<2x8xf32> to vector<2x8x1xf32>
    %85 = tpu.reciprocal %84 {approx = true} : vector<2x8x1xf32> -> vector<2x8x1xf32>
    %86 = vector.broadcast %85 : vector<2x8x1xf32> to vector<2x8x8xf32>
    %87 = arith.mulf %82, %86 : vector<2x8x8xf32>
    %88 = arith.mulf %87, %87 : vector<2x8x8xf32>
    %89 = arith.subf %87, %88 : vector<2x8x8xf32>
    %90 = arith.mulf %89, %89 : vector<2x8x8xf32>
    %91 = arith.mulf %90, %77 : vector<2x8x8xf32>
    %92 = arith.truncf %87 : vector<2x8x8xf32> to vector<2x8x8xbf16>
    %93 = arith.truncf %21 : vector<16x8xf32> to vector<16x8xbf16>
    %94 = vector.shape_cast %93 : vector<16x8xbf16> to vector<2x8x8xbf16>
    "tpu.trace_start"() <{level = 10 : i32, message = "bqk,bkd->bqd"}> : () -> ()
    %cst_46 = arith.constant dense<0.000000e+00> : vector<2x8x8xf32>
    %95 = tpu.matmul %92, %94, %cst_46 {dimension_numbers = #tpu.dot_dimension_numbers<[2], [1], [1], [2], [0, 0, 0, 1, 1, 2], [0], [0]>} : vector<2x8x8xbf16>, vector<2x8x8xbf16>, vector<2x8x8xf32> -> vector<2x8x8xf32>
    "tpu.trace_stop"() : () -> ()
    %96 = arith.truncf %91 : vector<2x8x8xf32> to vector<2x8x8xbf16>
    %97 = arith.mulf %21, %21 : vector<16x8xf32>
    %98 = arith.addf %54, %97 : vector<16x8xf32>
    %99 = arith.truncf %98 : vector<16x8xf32> to vector<16x8xbf16>
    %100 = vector.shape_cast %99 : vector<16x8xbf16> to vector<2x8x8xbf16>
    "tpu.trace_start"() <{level = 10 : i32, message = "bqk,bkd->bqd"}> : () -> ()
    %cst_47 = arith.constant dense<0.000000e+00> : vector<2x8x8xf32>
    %101 = tpu.matmul %96, %100, %cst_47 {dimension_numbers = #tpu.dot_dimension_numbers<[2], [1], [1], [2], [0, 0, 0, 1, 1, 2], [0], [0]>} : vector<2x8x8xbf16>, vector<2x8x8xbf16>, vector<2x8x8xf32> -> vector<2x8x8xf32>
    "tpu.trace_stop"() : () -> ()
    %102 = arith.mulf %87, %87 : vector<2x8x8xf32>
    %103 = arith.truncf %102 : vector<2x8x8xf32> to vector<2x8x8xbf16>
    %104 = arith.truncf %54 : vector<16x8xf32> to vector<16x8xbf16>
    %105 = vector.shape_cast %104 : vector<16x8xbf16> to vector<2x8x8xbf16>
    "tpu.trace_start"() <{level = 10 : i32, message = "bqk,bkd->bqd"}> : () -> ()
    %cst_48 = arith.constant dense<0.000000e+00> : vector<2x8x8xf32>
    %106 = tpu.matmul %103, %105, %cst_48 {dimension_numbers = #tpu.dot_dimension_numbers<[2], [1], [1], [2], [0, 0, 0, 1, 1, 2], [0], [0]>} : vector<2x8x8xbf16>, vector<2x8x8xbf16>, vector<2x8x8xf32> -> vector<2x8x8xf32>
    "tpu.trace_stop"() : () -> ()
    %107 = arith.addf %101, %106 : vector<2x8x8xf32>
    %108 = arith.index_cast %arg1 : i32 to index
    %c0_49 = arith.constant 0 : index
    %c0_50 = arith.constant 0 : index
    %109 = vector.load %arg7[%108, %c0_49, %c0_50] : memref<4x8x32xbf16, #tpu.memory_space<vmem>>, vector<1x8x32xbf16>
    %110 = vector.shape_cast %109 : vector<1x8x32xbf16> to vector<8x32xbf16>
    %c0_51 = arith.constant 0 : index
    %c0_52 = arith.constant 0 : index
    %c0_53 = arith.constant 0 : index
    %111 = vector.load %arg8[%c0_51, %c0_52, %c0_53] : memref<2x8x32xf32, #tpu.memory_space<vmem>>, vector<2x8x32xf32>
    %112 = vector.shape_cast %95 : vector<2x8x8xf32> to vector<16x8xf32>
    %113 = arith.truncf %112 : vector<16x8xf32> to vector<16x8xbf16>
    %cst_54 = arith.constant dense<0.000000e+00> : vector<16x32xf32>
    %114 = tpu.matmul %113, %110, %cst_54 {dimension_numbers = #tpu.dot_dimension_numbers<[1], [0], [0], [1], [0, 0, 1, 1], [], []>} : vector<16x8xbf16>, vector<8x32xbf16>, vector<16x32xf32> -> vector<16x32xf32>
    %115 = vector.shape_cast %114 : vector<16x32xf32> to vector<2x8x32xf32>
    %116 = arith.addf %111, %115 : vector<2x8x32xf32>
    %c0_55 = arith.constant 0 : index
    %c0_56 = arith.constant 0 : index
    %c0_57 = arith.constant 0 : index
    %117 = vector.load %arg8[%c0_55, %c0_56, %c0_57] : memref<2x8x32xf32, #tpu.memory_space<vmem>>, vector<2x8x32xf32>
    tpu.vector_store %arg8[%c0_55, %c0_56, %c0_57], %116 {strides = array<i32>} : memref<2x8x32xf32, #tpu.memory_space<vmem>>, vector<2x8x32xf32>,
    %c0_58 = arith.constant 0 : index
    %c0_59 = arith.constant 0 : index
    %c0_60 = arith.constant 0 : index
    %118 = vector.load %arg9[%c0_58, %c0_59, %c0_60] : memref<2x8x32xf32, #tpu.memory_space<vmem>>, vector<2x8x32xf32>
    %119 = vector.shape_cast %107 : vector<2x8x8xf32> to vector<16x8xf32>
    %120 = arith.truncf %119 : vector<16x8xf32> to vector<16x8xbf16>
    %cst_61 = arith.constant dense<0.000000e+00> : vector<16x32xf32>
    %121 = tpu.matmul %120, %110, %cst_61 {dimension_numbers = #tpu.dot_dimension_numbers<[1], [0], [0], [1], [0, 0, 1, 1], [], []>} : vector<16x8xbf16>, vector<8x32xbf16>, vector<16x32xf32> -> vector<16x32xf32>
    %122 = vector.shape_cast %121 : vector<16x32xf32> to vector<2x8x32xf32>
    %123 = arith.addf %118, %122 : vector<2x8x32xf32>
    %c0_62 = arith.constant 0 : index
    %c0_63 = arith.constant 0 : index
    %c0_64 = arith.constant 0 : index
    %124 = vector.load %arg9[%c0_62, %c0_63, %c0_64] : memref<2x8x32xf32, #tpu.memory_space<vmem>>, vector<2x8x32xf32>
    tpu.vector_store %arg9[%c0_62, %c0_63, %c0_64], %123 {strides = array<i32>} : memref<2x8x32xf32, #tpu.memory_space<vmem>>, vector<2x8x32xf32>,
    return
  }
  func.func @transform_0(%arg0: i32, %arg1: i32) -> (i32, i32, i32) {
    %c0_i32 = arith.constant 0 : i32
    %c0_i32_0 = arith.constant 0 : i32
    %c0_i32_1 = arith.constant 0 : i32
    return %arg0, %c0_i32, %c0_i32_0 : i32, i32, i32
  }
  func.func @transform_1(%arg0: i32, %arg1: i32) -> (i32, i32, i32) {
    %c0_i32 = arith.constant 0 : i32
    %c0_i32_0 = arith.constant 0 : i32
    %c0_i32_1 = arith.constant 0 : i32
    return %arg0, %c0_i32, %c0_i32_0 : i32, i32, i32
  }
  func.func @transform_2(%arg0: i32, %arg1: i32) -> (i32, i32, i32) {
    %c0_i32 = arith.constant 0 : i32
    %c0_i32_0 = arith.constant 0 : i32
    %c0_i32_1 = arith.constant 0 : i32
    %c0_i32_2 = arith.constant 0 : i32
    return %c0_i32, %c0_i32_0, %c0_i32_1 : i32, i32, i32
  }
  func.func @transform_3(%arg0: i32, %arg1: i32) -> (i32, i32, i32) {
    %c0_i32 = arith.constant 0 : i32
    %c0_i32_0 = arith.constant 0 : i32
    %c0_i32_1 = arith.constant 0 : i32
    %c0_i32_2 = arith.constant 0 : i32
    return %c0_i32, %c0_i32_0, %c0_i32_1 : i32, i32, i32
  }
  func.func @transform_4(%arg0: i32, %arg1: i32) -> (i32, i32, i32) {
    %c0_i32 = arith.constant 0 : i32
    %c0_i32_0 = arith.constant 0 : i32
    %c0_i32_1 = arith.constant 0 : i32
    %c0_i32_2 = arith.constant 0 : i32
    return %c0_i32, %c0_i32_0, %c0_i32_1 : i32, i32, i32
  }
  func.func @transform_5(%arg0: i32, %arg1: i32) -> (i32, i32, i32) {
    %c0_i32 = arith.constant 0 : i32
    %c0_i32_0 = arith.constant 0 : i32
    %c0_i32_1 = arith.constant 0 : i32
    %c0_i32_2 = arith.constant 0 : i32
    return %c0_i32, %c0_i32_0, %c0_i32_1 : i32, i32, i32
  }
  func.func @transform_6(%arg0: i32, %arg1: i32) -> (i32, i32, i32) {
    %c0_i32 = arith.constant 0 : i32
    %c0_i32_0 = arith.constant 0 : i32
    %c0_i32_1 = arith.constant 0 : i32
    return %arg0, %c0_i32, %c0_i32_0 : i32, i32, i32
  }
  func.func @transform_7(%arg0: i32, %arg1: i32) -> (i32, i32, i32) {
    %c0_i32 = arith.constant 0 : i32
    %c0_i32_0 = arith.constant 0 : i32
    %c0_i32_1 = arith.constant 0 : i32
    return %arg0, %c0_i32, %c0_i32_0 : i32, i32, i32
  }
}

</mosaic_0001>

<bundles_post_ra>
// kernel: tpu_custom_call.1
= control target key start
LH: loop header
LB: loop body
LE: loop exit
PB: predicated region body
PF: predicated region fallthrough
CT: control target
= control target key end

     0   :  { %13 = vsyncpa [#allocation6], 0  ;;  %s2645_s0 = inlined_call_operand.vmem [shape: f32[2,8,32], index: 0, kind: input, shape index: {}]   ;;  %s2646_s1 = inlined_call_operand.vmem [shape: f32[2,8,32], index: 1, kind: input, shape index: {}]   ;;  %s2647_s2 = inlined_call_operand.vmem [shape: bf16[12,32,8], index: 2, kind: input, shape index: {}]   ;;  %s2648_s3 = inlined_call_operand.vmem [shape: bf16[12,32,8], index: 3, kind: input, shape index: {}]   ;;  %s2649_s4 = inlined_call_operand.vmem [shape: bf16[12,32,8], index: 4, kind: input, shape index: {}]   ;;  %s2650_s5 = inlined_call_operand.vmem [shape: bf16[4,8,32], index: 5, kind: input, shape index: {}]   ;;  %s2651_s6 = inlined_call_operand.hbm [shape: f32[2,8,32], index: 6, kind: output, shape index: {0}]   ;;  %s2652_s7 = inlined_call_operand.hbm [shape: f32[2,8,32], index: 7, kind: output, shape index: {1}]  }
   0x1   :  { %14 = vsyncpa [#allocation8], 0  ;;  %s2386_s24 = smov 0   ;;  %s2388_s25 = smov 0  }
   0x2   :  { %s2390_s26 = smov 0  }
   0x3 LB: > { %s1836_s27 = sadd.s32 4294967295, %s2338_s26   ;;  %s29_s28 = sadd.s32 1, %s2334_s25  ;;  %s2338_s26 = sphi %s2390_s26, %s20_s26   ;;  %s2334_s25 = sphi %s2388_s25, %s2655_s25   ;;  %s2330_s24 = sphi %s2386_s24, %s2654_s24  }
   0x4   : > { %p30_p0 = scmp.ge.s32.totalorder %s29_s28, 4  ;;  %p1840_p1 = scmp.ge.s32.totalorder %s2338_s26, 1 }
   0x5   : > { %p266_p2 = scmp.lt.s32.totalorder %s2338_s26, 5 }
   0x6   : > { %s2657_s28 = smov (%p30_p0, %s29_s28), 0 }
   0x7   : > { %p267_p3 = pnand %p1840_p1, %p266_p2 }
   0x8   : > { %p1841_p4 = scmp.ne.s32.totalorder (!%p267_p3), %s2330_s24, 0 }
   0x9   : > { %270 = sbr.rel (%p267_p3) target bundleno = 1174 (0x496), region = 44 }
   0xe   : > { %316 = sbr.rel (%p1841_p4) target bundleno = 28 (0x1c), region = 48 }
  0x13   : > { %v317_v0 = vld [vmem:[%s2645_s0] sm:$0xff]  ;;  %vm321_vm0 = vcmask 261120   ;;  %v318_v1 = vld [vmem:[%s2645_s0 + $0x8] sm:$0xff]  ;;  %vm334_vm1 = vcmask 257024  }
  0x14   : > { %v319_v2 = vld [vmem:[%s2646_s1] sm:$0xff]  ;;  %322 = vst.msk [vmem:[#allocation5] sm:$0xff] %vm321_vm0, %v317_v0  ;;  %323 = vst.msk [vmem:[#allocation5 + $0x8] sm:$0xff] %vm321_vm0, %v318_v1  ;;  %v320_v3 = vld [vmem:[%s2646_s1 + $0x8] sm:$0xff]  ;;  %v1951_v4 = vpack.c.bf16 %v317_v0, %v317_v0  ;;  %v1952_v5 = vpack.c.bf16 %v318_v1, %v318_v1  ;;  %v347_v7 = vmul.f32 %v317_v0, %v317_v0 }
  0x15   : > { %324 = vst.msk [vmem:[#allocation7] sm:$0xff] %vm321_vm0, %v319_v2  ;;  %v1953_v6 = vpack.c.bf16 %v319_v2, %v319_v2  ;;  %325 = vst.msk [vmem:[#allocation7 + $0x8] sm:$0xff] %vm321_vm0, %v320_v3  ;;  %v1954_v8 = vpack.c.bf16 %v320_v3, %v320_v3  ;;  %v348_v9 = vmul.f32 %v318_v1, %v318_v1 }
  0x16   : > { %335 = vst.msk [vmem:[#allocation2] sm:$0xf] %vm334_vm1, %v1951_v4  ;;  %336 = vst.msk [vmem:[#allocation2 + $0x4] sm:$0xf] %vm334_vm1, %v1952_v5  ;;  %v349_v10 = vadd.f32 %v347_v7, %v319_v2 }
  0x17   : > { %345 = vst.msk [vmem:[#allocation3] sm:$0xf] %vm334_vm1, %v1953_v6  ;;  %346 = vst.msk [vmem:[#allocation3 + $0x4] sm:$0xf] %vm334_vm1, %v1954_v8  ;;  %v350_v11 = vadd.f32 %v348_v9, %v320_v3 }
  0x18   : > { %v1955_v12 = vpack.c.bf16 %v349_v10, %v349_v10 }
  0x19   : > { %v1956_v13 = vpack.c.bf16 %v350_v11, %v350_v11 }
  0x1a   : > { %359 = vst.msk [vmem:[#allocation4] sm:$0xf] %vm334_vm1, %v1955_v12 }
  0x1b   : > { %360 = vst.msk [vmem:[#allocation4 + $0x4] sm:$0xf] %vm334_vm1, %v1956_v13 }
  0x1c PF: > { %s1957_s14 = smul.u32 48, %s2330_s24  ;;  %v2340_v14 = vmov 0.0   ;;  %vm2341_vm2 = vmmov 0   ;;  %vm392_vm3 = vcmask 261120   ;;  %vm941_vm4 = vcmask 64512   ;;  %s1942_s29 = sshll.u32 %s2330_s24, 2 }
  0x1d   : > { %2033 = vmatprep.subr.bf16.mxu0 %v2340_v14  ;;  %2041 = vmatprep.subr.bf16.mxu1 %v2340_v14  ;;  %v2235_v19 = vld [vmem:[#allocation2] sm:$0xff]   ;;  %vm1293_vm5 = vcmask 1043456   ;;  %s1588_s9 = scalar_lea.vmem %s2650_s5, %s1942_s29  ;;  %s2342_s24 = smov [#allocation5]  }
  0x1e   : > { %s370_s17 = scalar_lea.vmem %s2647_s2, %s1957_s14  ;;  %2037 = vmatprep.mubr.msk.bf16.mxu0 %vm2341_vm2, %v2340_v14  ;;  %2045 = vmatprep.mubr.msk.bf16.mxu1 %vm2341_vm2, %v2340_v14  ;;  %s2441_s20 = scalar_lea.vmem %s2649_s4, %s1957_s14  ;;  %v2243_v29 = vld [vmem:[#allocation3] sm:$0xff]  }
  0x1f   : > { %v2231_v15 = vld [vmem:[%s370_s17 + $0x8] sm:$0xff]   ;;  %v2232_v16 = vld [vmem:[%s370_s17 + $0x18] sm:$0xff]   ;;  %v2233_v17 = vld [vmem:[%s370_s17] sm:$0xff]   ;;  %s2446_s23 = scalar_lea.vmem %s2648_s3, %s1957_s14  ;;  %s1704_s10 = sshll.u32 %s2342_s24, 4  ;;  %s1705_s10 = int_to_ptr.vmem [resolvable:$true] %s1704_s10 }
  0x20   : > { %2034 = vmatpush3.bf16.msra.mxu0 %v2231_v15  ;;  %2042 = vmatpush3.bf16.msra.mxu1 %v2232_v16  ;;  %v2234_v18 = vld [vmem:[%s370_s17 + $0x10] sm:$0xff]   ;;  %v2236_v20 = vld [vmem:[%s370_s17 + $0x28] sm:$0xff]   ;;  %v2237_v22 = vld [vmem:[%s370_s17 + $0x20] sm:$0xff]   ;;  %p2607_p5 = scmp.eq.s32.totalorder %s1836_s27, 3  ;;  %s2260_s12 = scalar_lea.vmem %s1705_s10, 256 }
  0x21   : > { %2035 = vmatprep.subr.bf16.mxu0 %v2340_v14  ;;  %2043 = vmatprep.subr.bf16.mxu1 %v2340_v14  ;;  %v2238_v21 = vld [vmem:[%s2441_s20 + $0x8] sm:$0xff]   ;;  %v2240_v23 = vld [vmem:[%s2441_s20] sm:$0xff]   ;;  %v2244_v26 = vld [vmem:[%s2441_s20 + $0x18] sm:$0xff]   ;;  %p2261_p6 = scmp.ne.s32.totalorder %s1705_s10, %s2260_s12  ;;  %p2267_p9 = scmp.lt.s32.totalorder %s1705_s10, %s1705_s10 }
  0x22   : > { %v2239_v24 = vld [vmem:[%s2446_s23 + $0x8] sm:$0xff]   ;;  %v2242_v25 = vld [vmem:[#allocation4] sm:$0xff]   ;;  %v2241_v27 = vld [vmem:[%s2446_s23] sm:$0xff]   ;;  %p2268_p10 = scmp.lt.s32.totalorder %s2260_s12, %s2260_s12 }
  0x23   : > { %v2246_v28 = vld [vmem:[%s2441_s20 + $0x10] sm:$0xff]   ;;  %v2245_v30 = vld [vmem:[%s2446_s23 + $0x18] sm:$0xff]   ;;  %v2248_v31 = vld [vmem:[%s2441_s20 + $0x28] sm:$0xff]   ;;  %p2262_p7 = pnand %p2261_p6, %p2607_p5 }
  0x24   : > { %2036 = vmatpush3.bf16.msra.mxu0 %v2233_v17  ;;  %2044 = vmatpush3.bf16.msra.mxu1 %v2234_v18  ;;  %v2247_v32 = vld [vmem:[%s2446_s23 + $0x10] sm:$0xff]   ;;  %v2250_v33 = vld [vmem:[%s2441_s20 + $0x20] sm:$0xff]   ;;  %v2249_v34 = vld [vmem:[%s2446_s23 + $0x28] sm:$0xff]   ;;  %p2269_p11 = por %p2268_p10, %p2267_p9 }
  0x25   : > { %2049 = vmatprep.subr.bf16.mxu0 %v2340_v14  ;;  %2057 = vmatprep.subr.bf16.mxu1 %v2340_v14  ;;  %v2251_v35 = vld [vmem:[%s2446_s23 + $0x20] sm:$0xff]   ;;  %p2263_p8 = pneg %p2262_p7 }
  0x27   : > { %2038 = vmatmul.mubr.msk.bf16.vlgmr.msra.gmra.mxu0 %vm392_vm3, %v2235_v19  ;;  %2046 = vmatmul.mubr.msk.bf16.vlgmr.msra.gmra.mxu1 %vm392_vm3, %v2235_v19  ;;  %p2270_p12 = pnand %p2269_p11, %p2263_p8 }
  0x28   : > { %2050 = vmatpush3.bf16.msra.mxu0 %v2236_v20  ;;  %2053 = vmatprep.mubr.msk.bf16.mxu0 %vm2341_vm2, %v2340_v14 }
  0x29   : > { %2051 = vmatprep.subr.bf16.mxu0 %v2340_v14  ;;  %2058 = vmatpush3.bf16.msra.mxu1 %v2238_v21 }
  0x2a   : > { %2061 = vmatprep.mubr.msk.bf16.mxu1 %vm2341_vm2, %v2340_v14  ;;  %2059 = vmatprep.subr.bf16.mxu1 %v2340_v14 }
  0x2c   : > { %2052 = vmatpush3.bf16.msra.mxu0 %v2237_v22 }
  0x2d   : > { %2065 = vmatprep.subr.bf16.mxu0 %v2340_v14  ;;  %2060 = vmatpush3.bf16.msra.mxu1 %v2240_v23 }
  0x2e   : > { %2073 = vmatprep.subr.bf16.mxu1 %v2340_v14 }
  0x2f   : > { %2054 = vmatmul.mubr.msk.bf16.vlgmr.msra.gmra.mxu0 %vm392_vm3, %v2235_v19 }
  0x30   : > { %2066 = vmatpush3.bf16.msra.mxu0 %v2239_v24  ;;  %2069 = vmatprep.mubr.msk.bf16.mxu0 %vm2341_vm2, %v2340_v14 }
  0x31   : > { %2067 = vmatprep.subr.bf16.mxu0 %v2340_v14  ;;  %2062 = vmatmul.mubr.msk.bf16.vlgmr.msra.gmra.mxu1 %vm392_vm3, %v2242_v25 }
  0x32   : > { %2074 = vmatpush3.bf16.msra.mxu1 %v2244_v26  ;;  %2077 = vmatprep.mubr.msk.bf16.mxu1 %vm2341_vm2, %v2340_v14 }
  0x33   : > { %2075 = vmatprep.subr.bf16.mxu1 %v2340_v14 }
  0x34   : > { %2068 = vmatpush3.bf16.msra.mxu0 %v2241_v27 }
  0x35   : > { %2081 = vmatprep.subr.bf16.mxu0 %v2340_v14 }
  0x36   : > { %2076 = vmatpush3.bf16.msra.mxu1 %v2246_v28 }
  0x37   : > { %2070 = vmatmul.mubr.msk.bf16.vlgmr.msra.gmra.mxu0 %vm392_vm3, %v2243_v29  ;;  %2089 = vmatprep.subr.bf16.mxu1 %v2340_v14 }
  0x38   : > { %2082 = vmatpush3.bf16.msra.mxu0 %v2245_v30  ;;  %2085 = vmatprep.mubr.msk.bf16.mxu0 %vm2341_vm2, %v2340_v14 }
  0x39   : > { %2083 = vmatprep.subr.bf16.mxu0 %v2340_v14  ;;  %2078 = vmatmul.mubr.msk.bf16.vlgmr.msra.gmra.mxu1 %vm392_vm3, %v2242_v25 }
  0x3a   : > { %2090 = vmatpush3.bf16.msra.mxu1 %v2248_v31  ;;  %2093 = vmatprep.mubr.msk.bf16.mxu1 %vm2341_vm2, %v2340_v14 }
  0x3b   : > { %2091 = vmatprep.subr.bf16.mxu1 %v2340_v14 }
  0x3c   : > { %2084 = vmatpush3.bf16.msra.mxu0 %v2247_v32 }
  0x3d   : > { %2097 = vmatprep.subr.bf16.mxu0 %v2340_v14 }
  0x3e   : > { %2092 = vmatpush3.bf16.msra.mxu1 %v2250_v33 }
  0x3f   : > { %2086 = vmatmul.mubr.msk.bf16.vlgmr.msra.gmra.mxu0 %vm392_vm3, %v2243_v29  ;;  %2105 = vmatprep.subr.bf16.mxu1 %v2340_v14 }
  0x40   : > { %2098 = vmatpush3.bf16.msra.mxu0 %v2249_v34  ;;  %2101 = vmatprep.mubr.msk.bf16.mxu0 %vm2341_vm2, %v2340_v14 }
  0x41   : > { %2099 = vmatprep.subr.bf16.mxu0 %v2340_v14  ;;  %2094 = vmatmul.mubr.msk.bf16.vlgmr.msra.gmra.mxu1 %vm392_vm3, %v2242_v25 }
  0x42   : > { %2107 = vmatprep.mubr.msk.bf16.mxu1 %vm2341_vm2, %v2340_v14 }
  0x44   : > { %2100 = vmatpush3.bf16.msra.mxu0 %v2251_v35 }
  0x45   : > { %2111 = vmatprep.subr.bf16.mxu0 %v2340_v14 }
  0x47   : > { %2102 = vmatmul.mubr.msk.bf16.vlgmr.msra.gmra.mxu0 %vm392_vm3, %v2243_v29 }
  0x48   : > { %2113 = vmatprep.mubr.msk.bf16.mxu0 %vm2341_vm2, %v2340_v14 }
  0xe7   : > { %v430_v36 = vpop.f32.mrf.mxu0  ;;  %v491_v37 = vpop.f32.mrf.mxu1 }
  0xe8   : > { %v1962_v38 = vpack.c.bf16 %v491_v37, %v491_v37  ;;  %v1960_v47 = vpack.c.bf16 %v430_v36, %v430_v36  ;;  %v1042_v6 = vmul.f32 %v491_v37, %v491_v37  ;;  %v1052_v16 = vmul.f32 %v430_v36, %v430_v36 }
  0xe9   : > { %v2039_v39 = vpop.f32.mrf.mxu0  ;;  %v2047_v40 = vpop.f32.mrf.mxu1 }
  0xea   : > { %v946_v42 = vsel %vm941_vm4, %v1962_v38, 0  ;;  %v1968_v27 = vpack.c.bf16 %v1052_v16, %v1052_v16 }
  0xeb   : > { %v433_v41 = vpop.f32.mrf.mxu0  ;;  %v494_v43 = vpop.f32.mrf.mxu1  ;;  %2106 = vmatpush3.bf16.xpose.msra.mxu1 %v946_v42 }
  0xec   : > { %v1963_v44 = vpack.c.bf16 %v494_v43, %v494_v43  ;;  %2117 = vmatprep.subr.bf16.mxu1 %v2340_v14  ;;  %v1961_v54 = vpack.c.bf16 %v433_v41, %v433_v41  ;;  %v1043_v17 = vmul.f32 %v494_v43, %v494_v43  ;;  %v1053_v28 = vmul.f32 %v433_v41, %v433_v41 }
  0xed   : > { %v2040_v45 = vpop.f32.mrf.mxu0  ;;  %v2048_v46 = vpop.f32.mrf.mxu1 }
  0xee   : > { %v992_v49 = vsel %vm941_vm4, %v1963_v44, 0  ;;  %v1969_v37 = vpack.c.bf16 %v1053_v28, %v1053_v28 }
  0xef   : > { %v2505_v48 = vpop.f32.mrf.mxu0  ;;  %2112 = vmatpush3.bf16.xpose.msra.mxu0 %v992_v49 }
  0xf0   : > { %2123 = vmatprep.subr.bf16.mxu0 %v2340_v14  ;;  %v1385_v18 = vmul.f32 %v2505_v48, %v2505_v48  ;;  %v1972_v38 = vpack.c.bf16 %v2505_v48, %v2505_v48 }
  0xf1   : > { %v2055_v50 = vpop.f32.mrf.mxu0  ;;  %v625_v51 = vpop.f32.mrf.mxu1 }
  0xf2   : > { %2108 = vmatmul.mubr.msk.bf16.vlgmr.msra.gmra.mxu1 %vm941_vm4, %v1960_v47  ;;  %v1295_v44 = vsel %vm1293_vm5, %v1972_v38, 0 }
  0xf3   : > { %v2510_v52 = vpop.f32.mrf.mxu0  ;;  %v2063_v53 = vpop.f32.mrf.mxu1  ;;  %2119 = vmatprep.mubr.msk.bf16.mxu1 %vm2341_vm2, %v2340_v14 }
  0xf4   : > { %v1386_v29 = vmul.f32 %v2510_v52, %v2510_v52  ;;  %v1973_v43 = vpack.c.bf16 %v2510_v52, %v2510_v52 }
  0xf5   : > { %v2056_v55 = vpop.f32.mrf.mxu0  ;;  %v628_v56 = vpop.f32.mrf.mxu1 }
  0xf6   : > { %2114 = vmatmul.mubr.msk.bf16.vlgmr.msra.gmra.mxu0 %vm941_vm4, %v1961_v54  ;;  %v1341_v46 = vsel %vm1293_vm5, %v1973_v43, 0 }
  0xf7   : > { %v686_v57 = vpop.f32.mrf.mxu0  ;;  %v2064_v58 = vpop.f32.mrf.mxu1  ;;  %2125 = vmatprep.mubr.msk.bf16.mxu0 %vm2341_vm2, %v2340_v14 }
  0xf8   : > { %v687_v32 = vadd.f32 %v686_v57, %v625_v51 }
  0xf9   : > { %v2071_v59 = vpop.f32.mrf.mxu0  ;;  %v751_v60 = vpop.f32.mrf.mxu1 }
  0xfa   : > { %v1964_v40 = vpack.c.bf16 %v687_v32, %v687_v32 }
  0xfb   : > { %v689_v61 = vpop.f32.mrf.mxu0  ;;  %v2079_v62 = vpop.f32.mrf.mxu1 }
  0xfc   : > { %v690_v41 = vadd.f32 %v689_v61, %v628_v56 }
  0xfd   : > { %v2072_v63 = vpop.f32.mrf.mxu0  ;;  %v754_v0 = vpop.f32.mrf.mxu1 }
  0xfe   : > { %v1965_v45 = vpack.c.bf16 %v690_v41, %v690_v41 }
  0xff   : > { %v804_v1 = vpop.f32.mrf.mxu0  ;;  %v2080_v2 = vpop.f32.mrf.mxu1 }
 0x100   : > { %v805_v3 = vadd.f32 %v804_v1, %v751_v60 }
 0x101   : > { %v2087_v4 = vpop.f32.mrf.mxu0  ;;  %v869_v5 = vpop.f32.mrf.mxu1 }
 0x102   : > { %v1970_v7 = vpack.c.bf16 %v805_v3, %v805_v3  ;;  %v1044_v10 = vadd.f32 %v1042_v6, %v805_v3 }
 0x103   : > { %v807_v8 = vpop.f32.mrf.mxu0  ;;  %v2095_v9 = vpop.f32.mrf.mxu1 }
 0x104   : > { %v808_v11 = vadd.f32 %v807_v8, %v754_v0  ;;  %v1070_v12 = vsel %vm941_vm4, %v1970_v7, 0  ;;  %v1966_v22 = vpack.c.bf16 %v1044_v10, %v1044_v10 }
 0x105   : > { %2118 = vmatpush3.bf16.xpose.msra.mxu1 %v1070_v12  ;;  %v2088_v13 = vpop.f32.mrf.mxu0  ;;  %v872_v15 = vpop.f32.mrf.mxu1 }
 0x106   : > { %v1971_v19 = vpack.c.bf16 %v808_v11, %v808_v11  ;;  %2129 = vmatprep.subr.bf16.mxu1 %v2340_v14  ;;  %v1045_v23 = vadd.f32 %v1043_v17, %v808_v11  ;;  %v1162_v34 = vsel %vm941_vm4, %v1966_v22, 0 }
 0x107   : > { %v922_v20 = vpop.f32.mrf.mxu0  ;;  %v2096_v21 = vpop.f32.mrf.mxu1 }
 0x108   : > { %v1116_v24 = vsel %vm941_vm4, %v1971_v19, 0  ;;  %v2522_v25 = vadd.f32 %v922_v20, %v869_v5  ;;  %v1967_v33 = vpack.c.bf16 %v1045_v23, %v1045_v23 }
 0x109   : > { %2124 = vmatpush3.bf16.xpose.msra.mxu0 %v1116_v24  ;;  %v2103_v26 = vpop.f32.mrf.mxu0 }
 0x10a   : > { %2135 = vmatprep.subr.bf16.mxu0 %v2340_v14  ;;  %v2528_v30 = vadd.f32 %v1385_v18, %v2522_v25  ;;  %v1208_v42 = vsel %vm941_vm4, %v1967_v33, 0  ;;  %v1976_v28 = vpack.c.bf16 %v2522_v25, %v2522_v25 }
 0x10b   : > { %v925_v31 = vpop.f32.mrf.mxu0 }
 0x10c   : > { %2120 = vmatmul.mubr.msk.bf16.vlgmr.msra.gmra.mxu1 %vm941_vm4, %v1968_v27  ;;  %v2532_v35 = vadd.f32 %v925_v31, %v872_v15  ;;  %v1974_v41 = vpack.c.bf16 %v2528_v30, %v2528_v30 }
 0x10d   : > { %2130 = vmatpush3.bf16.xpose.msra.mxu1 %v1162_v34  ;;  %2131 = vmatprep.mubr.msk.bf16.mxu1 %vm2341_vm2, %v2340_v14  ;;  %v2104_v36 = vpop.f32.mrf.mxu0 }
 0x10e   : > { %v2539_v39 = vadd.f32 %v1386_v29, %v2532_v35  ;;  %2141 = vmatprep.subr.bf16.mxu1 %v2340_v14  ;;  %v1977_v34 = vpack.c.bf16 %v2532_v35, %v2532_v35  ;;  %v1499_v30 = vsel %vm1293_vm5, %v1974_v41, 0 }
 0x110   : > { %2126 = vmatmul.mubr.msk.bf16.vlgmr.msra.gmra.mxu0 %vm941_vm4, %v1969_v37  ;;  %v1407_v37 = vsel %vm1293_vm5, %v1976_v28, 0  ;;  %v1453_v35 = vsel %vm1293_vm5, %v1977_v34, 0 }
 0x111   : > { %2136 = vmatpush3.bf16.xpose.msra.mxu0 %v1208_v42  ;;  %2137 = vmatprep.mubr.msk.bf16.mxu0 %vm2341_vm2, %v2340_v14 }
 0x112   : > { %2147 = vmatprep.subr.bf16.mxu0 %v2340_v14 }
 0x114   : > { %2132 = vmatmul.mubr.msk.bf16.vlgmr.msra.gmra.mxu1 %vm941_vm4, %v1964_v40 }
 0x115   : > { %2142 = vmatpush3.bf16.msra.mxu1 %v1295_v44  ;;  %2143 = vmatprep.mubr.msk.bf16.mxu1 %vm2341_vm2, %v2340_v14 }
 0x116   : > { %2153 = vmatprep.subr.bf16.mxu1 %v2340_v14 }
 0x118   : > { %2138 = vmatmul.mubr.msk.bf16.vlgmr.msra.gmra.mxu0 %vm941_vm4, %v1965_v45  ;;  %v1975_v45 = vpack.c.bf16 %v2539_v39, %v2539_v39 }
 0x119   : > { %2148 = vmatpush3.bf16.msra.mxu0 %v1341_v46  ;;  %2149 = vmatprep.mubr.msk.bf16.mxu0 %vm2341_vm2, %v2340_v14 }
 0x11a   : > { %2159 = vmatprep.subr.bf16.mxu0 %v2340_v14  ;;  %v1545_v39 = vsel %vm1293_vm5, %v1975_v45, 0 }
 0x1b2   : > { %v982_v47 = vpop.f32.mrf.mxu1 }
 0x1b3   : > { %v1034_v48 = vmul.f32 0.17677669, %v982_v47 }
 0x1b4   : > { %v2109_v49 = vpop.f32.mrf.mxu1 }
 0x1b5   : > { %v1252_v50 = vsel %vm941_vm4, %v1034_v48, -inf }
 0x1b6   : > { %1253 = vmax.xlane.f32.xlu0 %v1252_v50  ;;  %v985_v51 = vpop.f32.mrf.mxu1  ;;  %v1028_v52 = vpop.f32.mrf.mxu0 }
 0x1b7   : > { %v1035_v53 = vmul.f32 0.17677669, %v1028_v52 }
 0x1b8   : > { %v2110_v54 = vpop.f32.mrf.mxu1  ;;  %v2115_v55 = vpop.f32.mrf.mxu0 }
 0x1b9   : > { %v1255_v56 = vsel %vm941_vm4, %v1035_v53, -inf  ;;  %v1589_v54 = vld [vmem:[%s1588_s9] sm:$0xf] }
 0x1ba   : > { %1256 = vmax.xlane.f32.xlu0 %v1255_v56  ;;  %v1031_v57 = vpop.f32.mrf.mxu0  ;;  %v1597_v55 = vsel %vm1293_vm5, %v1589_v54, 0 }
 0x1bc   : > { %v2116_v58 = vpop.f32.mrf.mxu0 }
 0x1cc   : > { %v1106_v59 = vpop.f32.mrf.mxu1 }
 0x1ce   : > { %v2121_v60 = vpop.f32.mrf.mxu1 }
 0x1d0   : > { %v1109_v61 = vpop.f32.mrf.mxu1  ;;  %v1152_v62 = vpop.f32.mrf.mxu0 }
 0x1d2   : > { %v2122_v63 = vpop.f32.mrf.mxu1  ;;  %v2127_v0 = vpop.f32.mrf.mxu0 }
 0x1d4   : > { %v1155_v1 = vpop.f32.mrf.mxu0  ;;  %v1198_v2 = vpop.f32.mrf.mxu1 }
 0x1d5   : > { %v1199_v3 = vadd.f32 %v1198_v2, %v1106_v59 }
 0x1d6   : > { %v2128_v4 = vpop.f32.mrf.mxu0  ;;  %v2133_v5 = vpop.f32.mrf.mxu1 }
 0x1d7   : > { %v1250_v46 = vmul.f32 0.03125, %v1199_v3 }
 0x1d8   : > { %v1244_v6 = vpop.f32.mrf.mxu0  ;;  %v1201_v7 = vpop.f32.mrf.mxu1 }
 0x1d9   : > { %v1245_v8 = vadd.f32 %v1244_v6, %v1152_v62 }
 0x1da   : > { %v2139_v9 = vpop.f32.mrf.mxu0  ;;  %v2134_v10 = vpop.f32.mrf.mxu1 }
 0x1db   : > { %v1251_v50 = vmul.f32 0.03125, %v1245_v8 }
 0x1dc   : > { %v1247_v11 = vpop.f32.mrf.mxu0 }
 0x1de   : > { %v2140_v12 = vpop.f32.mrf.mxu0 }
 0x23f   : > { %v1254_v13 = vpop.xlane.xlu0 %1253 }
 0x240   : > { %v1258_v15 = vsub.f32 %v1034_v48, %v1254_v13 }
 0x242   : > { %v1260_v16 = vmul.f32 1.442695, %v1258_v15 }
 0x243   : > { %v1257_v17 = vpop.xlane.xlu0 %1256 }
 0x244   : > { %2252 = vpow2.f32 %v1260_v16  ;;  %v1259_v18 = vsub.f32 %v1035_v53, %v1257_v17 }
 0x246   : > { %v1262_v19 = vmul.f32 1.442695, %v1259_v18 }
 0x248   : > { %2254 = vpow2.f32 %v1262_v19 }
 0x251   : > { %v2253_v20 = vpop.eup %2252 }
 0x252   : > { %v1264_v21 = vsel %vm941_vm4, %v2253_v20, 0.0 }
 0x253   : > { %1265 = vadd.xlane.f32.xlu1 %v1264_v21 }
 0x255   : > { %v2255_v22 = vpop.eup %2254 }
 0x256   : > { %v1267_v23 = vsel %vm941_vm4, %v2255_v22, 0.0 }
 0x257   : > { %1268 = vadd.xlane.f32.xlu1 %v1267_v23 }
 0x2dc   : > { %v1266_v24 = vpop.xlane.xlu1 %1265 }
 0x2dd   : > { %2256 = vrcp.f32 %v1266_v24  ;;  %v1591_v24 = vld [vmem:[#allocation5 + $0x8] sm:$0xff] }
 0x2e0   : > { %v1269_v26 = vpop.xlane.xlu1 %1268 }
 0x2e1   : > { %2258 = vrcp.f32 %v1269_v26 }
 0x2ea   : > { %v2257_v27 = vpop.eup %2256 }
 0x2eb   : > { %v1272_v29 = vmul.f32 %v2257_v27, %v2253_v20  ;;  %v1590_v20 = vld [vmem:[#allocation5] sm:$0xff] }
 0x2ed   : > { %v1282_v31 = vpack.c.bf16 %v1272_v29, %v1272_v29  ;;  %v1274_v32 = vmul.f32 %v1272_v29, %v1272_v29 }
 0x2ee   : > { %v2259_v33 = vpop.eup %2258 }
 0x2ef   : > { %v1273_v36 = vmul.f32 %v2259_v33, %v2255_v22  ;;  %2144 = vmatmul.mubr.msk.bf16.vlgmr.msra.gmra.mxu1 %vm941_vm4, %v1282_v31  ;;  %v1276_v40 = vsub.f32 %v1272_v29, %v1274_v32  ;;  %v1395_v42 = vpack.c.bf16 %v1274_v32, %v1274_v32 }
 0x2f0   : > { %2154 = vmatpush3.bf16.msra.mxu1 %v1407_v37  ;;  %2155 = vmatprep.mubr.msk.bf16.mxu1 %vm2341_vm2, %v2340_v14 }
 0x2f1   : > { %v1283_v38 = vpack.c.bf16 %v1273_v36, %v1273_v36  ;;  %2165 = vmatprep.subr.bf16.mxu1 %v2340_v14  ;;  %v1275_v25 = vmul.f32 %v1273_v36, %v1273_v36  ;;  %v1278_v43 = vmul.f32 %v1276_v40, %v1276_v40 }
 0x2f3   : > { %2150 = vmatmul.mubr.msk.bf16.vlgmr.msra.gmra.mxu0 %vm941_vm4, %v1283_v38  ;;  %v1277_v44 = vsub.f32 %v1273_v36, %v1275_v25  ;;  %v1396_v47 = vpack.c.bf16 %v1275_v25, %v1275_v25  ;;  %v1280_v48 = vmul.f32 %v1278_v43, %v1250_v46 }
 0x2f4   : > { %2160 = vmatpush3.bf16.msra.mxu0 %v1453_v35  ;;  %2161 = vmatprep.mubr.msk.bf16.mxu0 %vm2341_vm2, %v2340_v14 }
 0x2f5   : > { %2171 = vmatprep.subr.bf16.mxu0 %v2340_v14  ;;  %v1279_v49 = vmul.f32 %v1277_v44, %v1277_v44  ;;  %v1383_v51 = vpack.c.bf16 %v1280_v48, %v1280_v48 }
 0x2f7   : > { %2156 = vmatmul.mubr.msk.bf16.vlgmr.msra.gmra.mxu1 %vm941_vm4, %v1395_v42  ;;  %v1281_v52 = vmul.f32 %v1279_v49, %v1251_v50 }
 0x2f8   : > { %2166 = vmatpush3.bf16.msra.mxu1 %v1499_v30  ;;  %2167 = vmatprep.mubr.msk.bf16.mxu1 %vm2341_vm2, %v2340_v14 }
 0x2f9   : > { %2177 = vmatprep.subr.bf16.mxu1 %v2340_v14  ;;  %v1384_v53 = vpack.c.bf16 %v1281_v52, %v1281_v52 }
 0x2fb   : > { %2162 = vmatmul.mubr.msk.bf16.vlgmr.msra.gmra.mxu0 %vm941_vm4, %v1396_v47 }
 0x2fc   : > { %2172 = vmatpush3.bf16.msra.mxu0 %v1545_v39  ;;  %2173 = vmatprep.mubr.msk.bf16.mxu0 %vm2341_vm2, %v2340_v14 }
 0x2fd   : > { %2183 = vmatprep.subr.bf16.mxu0 %v2340_v14 }
 0x2ff   : > { %2168 = vmatmul.mubr.msk.bf16.vlgmr.msra.gmra.mxu1 %vm941_vm4, %v1383_v51 }
 0x300   : > { %2179 = vmatprep.mubr.msk.bf16.mxu1 %vm2341_vm2, %v2340_v14  ;;  %2178 = vmatpush3.bf16.msra.mxu1 %v1597_v55 }
 0x303   : > { %2174 = vmatmul.mubr.msk.bf16.vlgmr.msra.gmra.mxu0 %vm941_vm4, %v1384_v53 }
 0x304   : > { %2185 = vmatprep.mubr.msk.bf16.mxu0 %vm2341_vm2, %v2340_v14  ;;  %2184 = vmatpush3.bf16.msra.mxu0 %v1597_v55 }
 0x3af   : > { %v1331_v56 = vpop.f32.mrf.mxu1 }
 0x3b1   : > { %v2145_v57 = vpop.f32.mrf.mxu1 }
 0x3b3   : > { %v1334_v58 = vpop.f32.mrf.mxu1  ;;  %v1377_v59 = vpop.f32.mrf.mxu0 }
 0x3b4   : > { %v1592_v60 = vpack.c.bf16 %v1377_v59, %v1331_v56 }
 0x3b5   : > { %v2146_v61 = vpop.f32.mrf.mxu1  ;;  %v2151_v62 = vpop.f32.mrf.mxu0 }
 0x3b6   : > { %2180 = vmatmul.mubr.msk.bf16.vlgmr.msra.gmra.mxu1 %vm941_vm4, %v1592_v60 }
 0x3b7   : > { %v1380_v14 = vpop.f32.mrf.mxu0  ;;  %v1443_v63 = vpop.f32.mrf.mxu1 }
 0x3b9   : > { %v2152_v0 = vpop.f32.mrf.mxu0  ;;  %v2157_v1 = vpop.f32.mrf.mxu1 }
 0x3bb   : > { %v1446_v2 = vpop.f32.mrf.mxu1  ;;  %v1489_v3 = vpop.f32.mrf.mxu0 }
 0x3bd   : > { %v2158_v4 = vpop.f32.mrf.mxu1  ;;  %v2163_v5 = vpop.f32.mrf.mxu0 }
 0x3bf   : > { %v1492_v6 = vpop.f32.mrf.mxu0  ;;  %v1535_v7 = vpop.f32.mrf.mxu1 }
 0x3c0   : > { %v1536_v12 = vadd.f32 %v1535_v7, %v1443_v63 }
 0x3c1   : > { %v2164_v8 = vpop.f32.mrf.mxu0  ;;  %v2169_v9 = vpop.f32.mrf.mxu1 }
 0x3c3   : > { %v1538_v10 = vpop.f32.mrf.mxu1  ;;  %v1581_v11 = vpop.f32.mrf.mxu0 }
 0x3c4   : > { %v1582_v13 = vadd.f32 %v1581_v11, %v1489_v3 }
 0x3c5   : > { %v2170_v15 = vpop.f32.mrf.mxu1  ;;  %v2175_v16 = vpop.f32.mrf.mxu0 }
 0x3c6   : > { %v1646_v17 = vpack.c.bf16 %v1582_v13, %v1536_v12 }
 0x3c7   : > { %v1584_v18 = vpop.f32.mrf.mxu0 }
 0x3c8   : > { %2186 = vmatmul.mubr.msk.bf16.vlgmr.msra.gmra.mxu0 %vm941_vm4, %v1646_v17 }
 0x3c9   : > { %v2176_v19 = vpop.f32.mrf.mxu0 }
 0x476   : > { %v1633_v21 = vpop.f32.mrf.mxu1 }
 0x477   : > { %v1640_v22 = vadd.f32 %v1633_v21, %v1590_v20 }
 0x478   : > { %v2181_v23 = vpop.f32.mrf.mxu1 }
 0x479   : > { %1642 = vst.msk [vmem:[#allocation5] sm:$0xff] %vm392_vm3, %v1640_v22 }
 0x47a   : > { %v1636_v26 = vpop.f32.mrf.mxu1 }
 0x47b   : > { %v1641_v27 = vadd.f32 %v1636_v26, %v1591_v24 }
 0x47c   : > { %v2182_v28 = vpop.f32.mrf.mxu1 }
 0x47d   : > { %1643 = vst.msk [vmem:[#allocation5 + $0x8] sm:$0xff] %vm392_vm3, %v1641_v27 }
 0x47e   : > { %2273 = shalt.err (!%p2270_p12)
}
 0x47f   : > { %s2343_s27 = smov 128   ;;  %s2344_s13 = smov 8   ;;  %v1644_v29 = vld [vmem:[#allocation7] sm:$0xff]  ;;  %v1645_v34 = vld [vmem:[#allocation7 + $0x8] sm:$0xff] }
 0x480   : > { %2190 = dma.vmem_to_hbm [thread:$0]  (%p2607_p5), %s1705_s10, 256, %s2651_s6, [#allocation6], %s2343_s27, %s2343_s27, %s2344_s13  }
 0x481   : > { %s2345_s16 = smov [#allocation7]  }
 0x482   : > { %s1720_s17 = sshll.u32 %s2345_s16, 4  ;;  %s1721_s17 = int_to_ptr.vmem [resolvable:$true] %s1720_s17 }
 0x483   : > { %s2284_s18 = scalar_lea.vmem %s1721_s17, 256  ;;  %p2291_p2 = scmp.lt.s32.totalorder %s1721_s17, %s1721_s17 }
 0x484   : > { %p2285_p13 = scmp.ne.s32.totalorder %s1721_s17, %s2284_s18  ;;  %p2292_p3 = scmp.lt.s32.totalorder %s2284_s18, %s2284_s18 }
 0x486   : > { %p2286_p0 = pnand %p2285_p13, %p2607_p5  ;;  %p2293_p4 = por %p2292_p3, %p2291_p2 }
 0x488   : > { %v1684_v31 = vpop.f32.mrf.mxu0  ;;  %p2287_p1 = pneg %p2286_p0 }
 0x489   : > { %v1691_v32 = vadd.f32 %v1684_v31, %v1644_v29 }
 0x48a   : > { %v2187_v33 = vpop.f32.mrf.mxu0  ;;  %p2294_p6 = pnand %p2293_p4, %p2287_p1 }
 0x48b   : > { %1693 = vst.msk [vmem:[#allocation7] sm:$0xff] %vm392_vm3, %v1691_v32 }
 0x48c   : > { %v1687_v36 = vpop.f32.mrf.mxu0 }
 0x48d   : > { %v1692_v37 = vadd.f32 %v1687_v36, %v1645_v34 }
 0x48e   : > { %v2188_v38 = vpop.f32.mrf.mxu0 }
 0x48f   : > { %1694 = vst.msk [vmem:[#allocation7 + $0x8] sm:$0xff] %vm392_vm3, %v1692_v37 }
 0x490   : > { %2297 = shalt.err (!%p2294_p6)
}
 0x491   : > { %2192 = dma.vmem_to_hbm [thread:$0]  (%p2607_p5), %s1721_s17, 256, %s2652_s7, [#allocation8], %s2343_s27, %s2343_s27, %s2344_s13  }
 0x492   : > { %2321 = dma.done.wait (%p2607_p5), [#allocation6], 256  }
 0x493   : > { %2323 = vsyncadd (%p2607_p5), [#allocation6], 4294967040 }
 0x494   : > { %2325 = dma.done.wait (%p2607_p5), [#allocation8], 256  }
 0x495   : > { %2327 = vsyncadd (%p2607_p5), [#allocation8], 4294967040 }
 0x496 PF: > { %s20_s26 = sadd.s32 1, %s2338_s26   ;;  %s2654_s24 = smov %s2334_s25 }
 0x497   : > { %p17_p7 = scmp.ge.s32.totalorder %s20_s26, 6   ;;  %s2655_s25 = smov %s2657_s28 }
 0x499   :  { %19 = sbr.rel (!%p17_p7) target bundleno = 3 (0x3), region = 98 }
 0x49e   :  { %1740 = vsyncpa [#allocation6], 1 }
 0x49f   :  { %1742 = vsyncpa [#allocation6 + $0x1], 1 }
 0x4a0   :  { %1743 = vsyncpa [#allocation8], 1 }

</bundles_post_ra>
